<compile_context>
chip_gen: v5e
topology: v5e:2x2
jax: 0.10.0
libtpu: 0.0.40
codegen_flags: <defaults>
</compile_context>

<pallas_src>
import functools

import jax
import jax.numpy as jnp
from jax.experimental import pallas as pl
from jax.experimental.pallas import tpu as pltpu

_LANE = 128
# v7x has 64 MiB physical VMEM -> keep the scoped limit <= ~48 MiB; v5e/v6e
# (128 MiB) could go higher.  TODO(synk): make this per-generation.
_VMEM_LIMIT = 48 * 1024 * 1024


def _round_up(x, m):
    return -(-x // m) * m


# ----------------------------------------------------------------------------
# Fused embedding: 3 MLPs (block-diag layer1) + pos add + (s,a,r) interleave
# ----------------------------------------------------------------------------
def _embed_kernel(xcat_ref, pos_ref, w1_ref, b1_ref,
                  w2s_ref, w2a_ref, w2r_ref, b2_ref, o_ref, *, hid, slope):
    x = xcat_ref[...]                                        # (tile, din_tot) f32
    # fused first layer of the three embed MLPs (block-diagonal weight), bf16 LHS
    h = jnp.dot(x.astype(jnp.bfloat16), w1_ref[...],
                preferred_element_type=jnp.float32) + b1_ref[...]   # (tile, 3*hid)
    h = jnp.where(h > 0, h, slope * h)                       # leaky_relu (f32 VPU)
    hb = h.astype(jnp.bfloat16)
    pos = pos_ref[...]                                       # (tile, D) f32
    ys = jnp.dot(hb[:, :hid], w2s_ref[...], preferred_element_type=jnp.float32)
    ya = jnp.dot(hb[:, hid:2 * hid], w2a_ref[...], preferred_element_type=jnp.float32)
    yr = jnp.dot(hb[:, 2 * hid:], w2r_ref[...], preferred_element_type=jnp.float32)
    # interleaved (s, a, r) layout: row n -> sequence tokens 3n, 3n+1, 3n+2
    y = jnp.concatenate([ys + pos, ya + pos, yr + pos], axis=-1) + b2_ref[...]
    o_ref[...] = y.astype(o_ref.dtype)


def embed_forward(xcat, pos, ep, slope=0.01, tile_rows=256):
    n, din = xcat.shape
    d = pos.shape[1]
    hid3 = ep["w1"].shape[1]
    hid = hid3 // 3
    tile = min(tile_rows, _round_up(n, 8))
    n_full = _round_up(n, tile)
    if n_full != n:
        xcat = jnp.pad(xcat, ((0, n_full - n), (0, 0)))
        pos = jnp.pad(pos, ((0, n_full - n), (0, 0)))
    out = pl.pallas_call(
        functools.partial(_embed_kernel, hid=hid, slope=slope),
        out_shape=jax.ShapeDtypeStruct((n_full, 3 * d), jnp.float32),
        grid=(n_full // tile,),
        in_specs=[
            pl.BlockSpec((tile, din), lambda i: (i, 0)),     # [state|action|reward]
            pl.BlockSpec((tile, d), lambda i: (i, 0)),       # positional rows
            pl.BlockSpec((din, hid3), lambda i: (0, 0)),     # block-diag W1
            pl.BlockSpec((1, hid3), lambda i: (0, 0)),       # b1
            pl.BlockSpec((hid, d), lambda i: (0, 0)),        # W2 state
            pl.BlockSpec((hid, d), lambda i: (0, 0)),        # W2 action
            pl.BlockSpec((hid, d), lambda i: (0, 0)),        # W2 reward
            pl.BlockSpec((1, 3 * d), lambda i: (0, 0)),      # b2 (concat)
        ],
        out_specs=pl.BlockSpec((tile, 3 * d), lambda i: (i, 0)),
        compiler_params=pltpu.CompilerParams(
            dimension_semantics=("parallel",),
            vmem_limit_bytes=_VMEM_LIMIT),
        cost_estimate=pl.CostEstimate(
            flops=2 * n * hid3 * (din + d),
            transcendentals=0,
            bytes_accessed=4 * n * (din + 4 * d) + 2 * hid3 * (din + d)),
    )(xcat, pos, ep["w1"], ep["b1"], ep["w2_s"], ep["w2_a"], ep["w2_r"], ep["b2"])
    return out[:n]


# ----------------------------------------------------------------------------
# Full trunk in one pallas_call: grid = (batch_blocks, n_layer)
#   - output block resident across the layer axis (activation carry)
#   - per-layer weights streamed / auto double-buffered (cross-layer prefetch)
# ----------------------------------------------------------------------------
def _trunk_kernel(x_ref, ln1g_ref, ln1b_ref, wqkv_ref, bqkv_ref,
                  wproj_ref, bproj_ref, ln2g_ref, ln2b_ref,
                  wf1_ref, bf1_ref, wf2_ref, bf2_ref, o_ref,
                  *, n_head, t3, slope, eps, scale):
    layer = pl.program_id(1)

    # The output block is resident across the layer axis and carries the
    # activations; seed it with the kernel input on the first layer.
    @pl.when(layer == 0)
    def _():
        o_ref[...] = x_ref[...]

    xb = o_ref[...]                                          # (nb, t3, d) f32
    nb, _, d = xb.shape
    dh = d // n_head
    xf = xb.reshape(nb * t3, d)

    # ---- pre-LN 1 + fused QKV projection over all nb*t3 rows ----
    mu = jnp.mean(xf, axis=-1, keepdims=True)
    var = jnp.mean((xf - mu) ** 2, axis=-1, keepdims=True)
    h = (xf - mu) * jax.lax.rsqrt(var + eps) * ln1g_ref[...] + ln1b_ref[...]
    qkv = jnp.dot(h.astype(jnp.bfloat16), wqkv_ref[...],
                  preferred_element_type=jnp.float32) + bqkv_ref[...]  # (nb*t3, 3d)
    qkv3 = qkv.reshape(nb, t3, 3 * d)

    # ---- causal MHA; per-head output accumulated straight into W_proj ----
    row = jax.lax.broadcasted_iota(jnp.int32, (t3, t3), 0)
    col = jax.lax.broadcasted_iota(jnp.int32, (t3, t3), 1)
    causal = col <= row
    wproj = wproj_ref[...]                                   # (d, d) bf16
    attn = jnp.zeros((nb * t3, d), jnp.float32)
    for hi in range(n_head):
        q = (qkv3[..., hi * dh:(hi + 1) * dh] * scale).astype(jnp.bfloat16)
        k = qkv3[..., d + hi * dh:d + (hi + 1) * dh].astype(jnp.bfloat16)
        v = qkv3[..., 2 * d + hi * dh:2 * d + (hi + 1) * dh].astype(jnp.bfloat16)
        s = jnp.einsum("bqd,bkd->bqk", q, k, preferred_element_type=jnp.float32)
        s = jnp.where(causal, s, -jnp.inf)
        m = jnp.max(s, axis=-1, keepdims=True)
        p = jnp.exp(s - m)
        lsum = jnp.sum(p, axis=-1, keepdims=True)
        o = jnp.einsum("bqk,bkd->bqd", p.astype(jnp.bfloat16), v,
                       preferred_element_type=jnp.float32)
        o = (o * pl.reciprocal(lsum, approx=True)).reshape(nb * t3, dh)
        attn = attn + jnp.dot(o.astype(jnp.bfloat16),
                              wproj[hi * dh:(hi + 1) * dh, :],
                              preferred_element_type=jnp.float32)
    x1 = xf + attn + bproj_ref[...]

    # ---- pre-LN 2 + FFN (dense stand-in for the MoE FFN) + residual ----
    mu2 = jnp.mean(x1, axis=-1, keepdims=True)
    var2 = jnp.mean((x1 - mu2) ** 2, axis=-1, keepdims=True)
    h2 = (x1 - mu2) * jax.lax.rsqrt(var2 + eps) * ln2g_ref[...] + ln2b_ref[...]
    f = jnp.dot(h2.astype(jnp.bfloat16), wf1_ref[...],
                preferred_element_type=jnp.float32) + bf1_ref[...]
    f = jnp.where(f > 0, f, slope * f)
    f = jnp.dot(f.astype(jnp.bfloat16), wf2_ref[...],
                preferred_element_type=jnp.float32) + bf2_ref[...]
    o_ref[...] = (x1 + f).reshape(nb, t3, d).astype(o_ref.dtype)


def trunk_forward(x, tp, n_head, slope=0.01, eps=1e-5):
    b, t3, d = x.shape
    n_layer = tp["qkv_w"].shape[0]
    ff = tp["ff_w1"].shape[2]
    dh = d // n_head
    scale = 1.0 / float(dh) ** 0.5

    # Batch enough sequences per grid step that dense matmuls see M ~ 128.
    # (On v7x with a tiny batch this can leave one TC idle -- acceptable here.)
    nb = min(b, max(1, 128 // t3))
    bp = _round_up(b, nb)
    xp = x if bp == b else jnp.pad(x, ((0, bp - b), (0, 0), (0, 0)))

    act_spec = pl.BlockSpec((nb, t3, d), lambda i, l: (i, 0, 0))

    def w_spec(*shape):
        return pl.BlockSpec((None,) + shape, lambda i, l: (l, 0, 0))

    flops = n_layer * bp * t3 * (2 * d * (4 * d + 2 * ff) + 4 * n_head * t3 * dh)
    bytes_accessed = (8 * bp * t3 * d
                      + n_layer * 2 * (4 * d * d + 2 * d * ff)
                      + n_layer * 4 * (7 * d + ff + 4 * d))
    out = pl.pallas_call(
        functools.partial(_trunk_kernel, n_head=n_head, t3=t3,
                          slope=slope, eps=eps, scale=scale),
        out_shape=jax.ShapeDtypeStruct((bp, t3, d), jnp.float32),
        grid=(bp // nb, n_layer),
        in_specs=[
            act_spec,                              # x (fetched once per batch block)
            w_spec(1, d), w_spec(1, d),            # ln1 gamma / beta
            w_spec(d, 3 * d), w_spec(1, 3 * d),    # W_qkv / b_qkv
            w_spec(d, d), w_spec(1, d),            # W_proj / b_proj
            w_spec(1, d), w_spec(1, d),            # ln2 gamma / beta
            w_spec(d, ff), w_spec(1, ff),          # W_ff1 / b_ff1
            w_spec(ff, d), w_spec(1, d),           # W_ff2 / b_ff2
        ],
        out_specs=act_spec,                        # resident across the layer axis
        compiler_params=pltpu.CompilerParams(
            dimension_semantics=("parallel", "arbitrary"),
            vmem_limit_bytes=_VMEM_LIMIT),
        cost_estimate=pl.CostEstimate(
            flops=flops,
            transcendentals=n_layer * bp * n_head * t3 * t3,
            bytes_accessed=bytes_accessed),
    )(xp, tp["ln1_g"], tp["ln1_b"], tp["qkv_w"], tp["qkv_b"],
      tp["proj_w"], tp["proj_b"], tp["ln2_g"], tp["ln2_b"],
      tp["ff_w1"], tp["ff_b1"], tp["ff_w2"], tp["ff_b2"])
    return out[:b]


# ----------------------------------------------------------------------------
# Fused final LN + action head on the state-token stream (strided ref load)
# ----------------------------------------------------------------------------
def _head_kernel(x_ref, g_ref, b_ref, w_ref, bw_ref, o_ref, *, n_tok, eps, tanh):
    # strided ref load: rows 0, 3, 6, ... of the interleaved sequence are the
    # state-token stream (de-interleave folded into the kernel)
    xs = x_ref[pl.ds(0, n_tok, 3), :]                        # (n_tok, D) f32
    mu = jnp.mean(xs, axis=-1, keepdims=True)
    var = jnp.mean((xs - mu) ** 2, axis=-1, keepdims=True)
    h = (xs - mu) * jax.lax.rsqrt(var + eps) * g_ref[...] + b_ref[...]
    y = jnp.dot(h.astype(jnp.bfloat16), w_ref[...],
                preferred_element_type=jnp.float32) + bw_ref[...]
    if tanh:
        y = jnp.tanh(y)
    o_ref[...] = y.astype(o_ref.dtype)


def head_forward(x, g, bt, w, bw, eps=1e-5, tanh=True):
    b, t3, d = x.shape
    n_tok = t3 // 3
    act_pad = w.shape[1]                      # lane-padded to a multiple of 128
    return pl.pallas_call(
        functools.partial(_head_kernel, n_tok=n_tok, eps=eps, tanh=tanh),
        out_shape=jax.ShapeDtypeStruct((b, n_tok, act_pad), jnp.float32),
        grid=(b,),
        in_specs=[
            pl.BlockSpec((None, t3, d), lambda i: (i, 0, 0)),
            pl.BlockSpec((1, d), lambda i: (0, 0)),
            pl.BlockSpec((1, d), lambda i: (0, 0)),
            pl.BlockSpec((d, act_pad), lambda i: (0, 0)),
            pl.BlockSpec((1, act_pad), lambda i: (0, 0)),
        ],
        out_specs=pl.BlockSpec((None, n_tok, act_pad), lambda i: (i, 0, 0)),
        compiler_params=pltpu.CompilerParams(
            dimension_semantics=("parallel",),
            vmem_limit_bytes=_VMEM_LIMIT),
        cost_estimate=pl.CostEstimate(
            flops=2 * b * n_tok * d * act_pad,
            transcendentals=b * n_tok * act_pad,
            bytes_accessed=4 * b * (t3 * d + n_tok * act_pad) + 2 * d * act_pad),
    )(x, g, bt, w, bw)


# ----------------------------------------------------------------------------
# Parameter init (deterministic, synthetic); weights bf16, biases / LN f32
# ----------------------------------------------------------------------------
def _normal(key, shape, scale=0.02):
    return scale * jax.random.normal(key, shape, jnp.float32)


def init_params(key, state_dim, action_dim, config, n_layer, n_head):
    tstep_dim = config["tstep_dim"]
    hidden_dim = config["hidden_dim"]
    ff_dim = config["ff_dim"] if config["ff_dim"] is not None else hidden_dim * 4
    max_steps = config["max_episode_steps"]
    assert tstep_dim == hidden_dim, "trunk assumes tstep_dim == hidden_dim"
    assert hidden_dim % n_head == 0
    d = hidden_dim
    hid = tstep_dim * 2
    din_tot = state_dim + action_dim + 1

    keys = jax.random.split(key, 12)

    # --- fused embeddings: block-diagonal layer1, per-modality layer2 ---
    w1 = jnp.zeros((din_tot, 3 * hid), jnp.float32)
    w1 = w1.at[:state_dim, :hid].set(_normal(keys[0], (state_dim, hid)))
    w1 = w1.at[state_dim:state_dim + action_dim, hid:2 * hid].set(
        _normal(keys[1], (action_dim, hid)))
    w1 = w1.at[state_dim + action_dim:, 2 * hid:].set(_normal(keys[2], (1, hid)))
    embed = {
        "w1": w1.astype(jnp.bfloat16),
        "b1": jnp.zeros((1, 3 * hid), jnp.float32),
        "w2_s": _normal(keys[3], (hid, d)).astype(jnp.bfloat16),
        "w2_a": _normal(keys[4], (hid, d)).astype(jnp.bfloat16),
        "w2_r": _normal(keys[5], (hid, d)).astype(jnp.bfloat16),
        "b2": jnp.zeros((1, 3 * d), jnp.float32),
    }

    # --- trunk: per-layer weights stacked along a leading layer axis ---
    lk = jax.random.split(keys[6], 4)
    trunk = {
        "ln1_g": jnp.ones((n_layer, 1, d), jnp.float32),
        "ln1_b": jnp.zeros((n_layer, 1, d), jnp.float32),
        "qkv_w": _normal(lk[0], (n_layer, d, 3 * d)).astype(jnp.bfloat16),
        "qkv_b": jnp.zeros((n_layer, 1, 3 * d), jnp.float32),
        "proj_w": _normal(lk[1], (n_layer, d, d)).astype(jnp.bfloat16),
        "proj_b": jnp.zeros((n_layer, 1, d), jnp.float32),
        "ln2_g": jnp.ones((n_layer, 1, d), jnp.float32),
        "ln2_b": jnp.zeros((n_layer, 1, d), jnp.float32),
        "ff_w1": _normal(lk[2], (n_layer, d, ff_dim)).astype(jnp.bfloat16),
        "ff_b1": jnp.zeros((n_layer, 1, ff_dim), jnp.float32),
        "ff_w2": _normal(lk[3], (n_layer, ff_dim, d)).astype(jnp.bfloat16),
        "ff_b2": jnp.zeros((n_layer, 1, d), jnp.float32),
    }

    # --- lane-dense action head (output columns padded to a multiple of 128) ---
    act_pad = _round_up(action_dim, _LANE)
    act_w = jnp.zeros((d, act_pad), jnp.float32)
    act_w = act_w.at[:, :action_dim].set(_normal(keys[7], (d, action_dim)))

    return {
        "action_dim": action_dim,
        "tstep_dim": d,
        "embed": embed,
        "pos_table": _normal(keys[8], (max_steps, d)),
        "trunk": trunk,
        "final_ln_g": jnp.ones((1, d), jnp.float32),
        "final_ln_b": jnp.zeros((1, d), jnp.float32),
        "act_w": act_w.astype(jnp.bfloat16),
        "act_b": jnp.zeros((1, act_pad), jnp.float32),
    }


# ----------------------------------------------------------------------------
# Forward pass (mirrors DecisionTransformerMoE.forward)
# ----------------------------------------------------------------------------
def forward(params, states, actions, rewards, timesteps=None,
            attention_masks=None, *, n_head, eval=False):
    # TODO(synk): attention_masks unused -- the reference forward also passes
    # None as the mask to the MoETransformer trunk.
    b, t, _ = states.shape
    d = params["tstep_dim"]
    max_steps = params["pos_table"].shape[0]

    if timesteps is None:
        # TODO(synk): reference's None-path assumes T == max_steps*train_episodes.
        timesteps = jnp.tile(jnp.arange(t, dtype=jnp.int32)[None], (b, 1))

    # XLA glue (tiny): concat raw inputs; data-dependent pos_table gather.
    xcat = jnp.concatenate([states, actions, rewards], axis=-1).reshape(b * t, -1)
    pos = params["pos_table"][jnp.clip(timesteps, 0, max_steps - 1)].reshape(b * t, d)

    # fused embed MLPs + pos add + (s,a,r) interleave; (b*t, 3d) == (b, 3t, d)
    x = embed_forward(xcat, pos, params["embed"]).reshape(b, 3 * t, d)

    # whole transformer trunk in one pallas_call (activations VMEM-resident
    # across layers; next layer's weights prefetched under current compute)
    x = trunk_forward(x, params["trunk"], n_head=n_head)

    # fused final LN + action head on the state-token stream (rows 0, 3, 6, ...)
    preds = head_forward(x, params["final_ln_g"], params["final_ln_b"],
                         params["act_w"], params["act_b"], tanh=True)
    action_preds = preds[..., :params["action_dim"]]
    if eval:
        action_preds = action_preds[:, -1:, :]

    balance_loss = jnp.float32(0.0)       # TODO(synk): MoE balance loss unavailable
    contrastive_loss = jnp.float32(0.0)   # TODO(synk): MoE contrastive loss unavailable
    return action_preds, balance_loss, contrastive_loss


# ----------------------------------------------------------------------------
if __name__ == "__main__":
    B, T = 2, 8
    state_dim, action_dim = 6, 3
    n_layer, n_head = 2, 4
    config = {
        "tstep_dim": 128,            # lane-dense model width (multiple of 128)
        "hidden_dim": 128,
        "ff_dim": 256,
        "train_episode_horizon": 1,
        "max_episode_steps": 16,
        "moe_config": {},
    }

    root = jax.random.PRNGKey(0)
    kp, ks, ka, kr = jax.random.split(root, 4)
    params = init_params(kp, state_dim, action_dim, config, n_layer, n_head)

    states = jax.random.normal(ks, (B, T, state_dim), jnp.float32)
    actions = jax.random.normal(ka, (B, T, action_dim), jnp.float32)
    rewards = jax.random.normal(kr, (B, T, 1), jnp.float32)
    timesteps = jnp.tile(jnp.arange(T, dtype=jnp.int32)[None], (B, 1))

    action_preds, bal, con = forward(params, states, actions, rewards,
                                     timesteps, n_head=n_head, eval=False)
    jax.block_until_ready(action_preds)
    assert action_preds.shape == (B, T, action_dim)
    assert bool(jnp.all(jnp.isfinite(action_preds)))
    print("KERNEL_OK")
</pallas_src>

<mosaic_0001>
module attributes {stable_mosaic.version = 11 : i64} {
  func.func @_embed_kernel(%arg0: i32, %arg1: memref<16x10xf32, #tpu.memory_space<vmem>>, %arg2: memref<16x128xf32, #tpu.memory_space<vmem>>, %arg3: memref<10x768xbf16, #tpu.memory_space<vmem>>, %arg4: memref<1x768xf32, #tpu.memory_space<vmem>>, %arg5: memref<256x128xbf16, #tpu.memory_space<vmem>>, %arg6: memref<256x128xbf16, #tpu.memory_space<vmem>>, %arg7: memref<256x128xbf16, #tpu.memory_space<vmem>>, %arg8: memref<1x384xf32, #tpu.memory_space<vmem>>, %arg9: memref<16x384xf32, #tpu.memory_space<vmem>>) attributes {dimension_semantics = [#tpu.dimension_semantics<parallel>], iteration_bounds = array<i64: 1>, scalar_prefetch = 0 : i64, scratch_operands = 0 : i64, tpu.core_type = #tpu.core_type<tc>, window_params = [{transform_indices = @transform_0, window_bounds = array<i64: 16, 10>}, {transform_indices = @transform_1, window_bounds = array<i64: 16, 128>}, {pipeline_mode = #tpu.pipeline_mode<synchronous>, transform_indices = @transform_2, window_bounds = array<i64: 10, 768>}, {pipeline_mode = #tpu.pipeline_mode<synchronous>, transform_indices = @transform_3, window_bounds = array<i64: 1, 768>}, {pipeline_mode = #tpu.pipeline_mode<synchronous>, transform_indices = @transform_4, window_bounds = array<i64: 256, 128>}, {pipeline_mode = #tpu.pipeline_mode<synchronous>, transform_indices = @transform_5, window_bounds = array<i64: 256, 128>}, {pipeline_mode = #tpu.pipeline_mode<synchronous>, transform_indices = @transform_6, window_bounds = array<i64: 256, 128>}, {pipeline_mode = #tpu.pipeline_mode<synchronous>, transform_indices = @transform_7, window_bounds = array<i64: 1, 384>}, {transform_indices = @transform_8, window_bounds = array<i64: 16, 384>}]} {
    %c0 = arith.constant 0 : index
    %c0_0 = arith.constant 0 : index
    %0 = vector.load %arg1[%c0, %c0_0] : memref<16x10xf32, #tpu.memory_space<vmem>>, vector<16x10xf32>
    %1 = arith.truncf %0 : vector<16x10xf32> to vector<16x10xbf16>
    %c0_1 = arith.constant 0 : index
    %c0_2 = arith.constant 0 : index
    %2 = vector.load %arg3[%c0_1, %c0_2] : memref<10x768xbf16, #tpu.memory_space<vmem>>, vector<10x768xbf16>
    %cst = arith.constant dense<0.000000e+00> : vector<16x768xf32>
    %3 = tpu.matmul %1, %2, %cst {dimension_numbers = #tpu.dot_dimension_numbers<[1], [0], [0], [1], [0, 0, 1, 1], [], []>} : vector<16x10xbf16>, vector<10x768xbf16>, vector<16x768xf32> -> vector<16x768xf32>
    %c0_3 = arith.constant 0 : index
    %c0_4 = arith.constant 0 : index
    %4 = vector.load %arg4[%c0_3, %c0_4] : memref<1x768xf32, #tpu.memory_space<vmem>>, vector<1x768xf32>
    %5 = vector.broadcast %4 : vector<1x768xf32> to vector<16x768xf32>
    %6 = arith.addf %3, %5 : vector<16x768xf32>
    %cst_5 = arith.constant 0.000000e+00 : f32
    %7 = vector.broadcast %cst_5 : f32 to vector<16x768xf32>
    %8 = arith.cmpf ogt, %6, %7 : vector<16x768xf32>
    %cst_6 = arith.constant 0.00999999977 : f32
    %9 = vector.broadcast %cst_6 : f32 to vector<16x768xf32>
    %10 = arith.mulf %9, %6 : vector<16x768xf32>
    %11 = arith.select %8, %6, %10 : vector<16x768xi1>, vector<16x768xf32>
    %12 = arith.truncf %11 : vector<16x768xf32> to vector<16x768xbf16>
    %c0_7 = arith.constant 0 : index
    %c0_8 = arith.constant 0 : index
    %13 = vector.load %arg2[%c0_7, %c0_8] : memref<16x128xf32, #tpu.memory_space<vmem>>, vector<16x128xf32>
    %14 = vector.extract_strided_slice %12 {offsets = [0, 0], sizes = [16, 256], strides = [1, 1]} : vector<16x768xbf16> to vector<16x256xbf16>
    %c0_9 = arith.constant 0 : index
    %c0_10 = arith.constant 0 : index
    %15 = vector.load %arg5[%c0_9, %c0_10] : memref<256x128xbf16, #tpu.memory_space<vmem>>, vector<256x128xbf16>
    %cst_11 = arith.constant dense<0.000000e+00> : vector<16x128xf32>
    %16 = tpu.matmul %14, %15, %cst_11 {dimension_numbers = #tpu.dot_dimension_numbers<[1], [0], [0], [1], [0, 0, 1, 1], [], []>} : vector<16x256xbf16>, vector<256x128xbf16>, vector<16x128xf32> -> vector<16x128xf32>
    %17 = vector.extract_strided_slice %12 {offsets = [0, 256], sizes = [16, 256], strides = [1, 1]} : vector<16x768xbf16> to vector<16x256xbf16>
    %c0_12 = arith.constant 0 : index
    %c0_13 = arith.constant 0 : index
    %18 = vector.load %arg6[%c0_12, %c0_13] : memref<256x128xbf16, #tpu.memory_space<vmem>>, vector<256x128xbf16>
    %cst_14 = arith.constant dense<0.000000e+00> : vector<16x128xf32>
    %19 = tpu.matmul %17, %18, %cst_14 {dimension_numbers = #tpu.dot_dimension_numbers<[1], [0], [0], [1], [0, 0, 1, 1], [], []>} : vector<16x256xbf16>, vector<256x128xbf16>, vector<16x128xf32> -> vector<16x128xf32>
    %20 = vector.extract_strided_slice %12 {offsets = [0, 512], sizes = [16, 256], strides = [1, 1]} : vector<16x768xbf16> to vector<16x256xbf16>
    %c0_15 = arith.constant 0 : index
    %c0_16 = arith.constant 0 : index
    %21 = vector.load %arg7[%c0_15, %c0_16] : memref<256x128xbf16, #tpu.memory_space<vmem>>, vector<256x128xbf16>
    %cst_17 = arith.constant dense<0.000000e+00> : vector<16x128xf32>
    %22 = tpu.matmul %20, %21, %cst_17 {dimension_numbers = #tpu.dot_dimension_numbers<[1], [0], [0], [1], [0, 0, 1, 1], [], []>} : vector<16x256xbf16>, vector<256x128xbf16>, vector<16x128xf32> -> vector<16x128xf32>
    %23 = arith.addf %16, %13 : vector<16x128xf32>
    %24 = arith.addf %19, %13 : vector<16x128xf32>
    %25 = arith.addf %22, %13 : vector<16x128xf32>
    %26 = tpu.concatenate %23, %24, %25 in 1 : vector<16x128xf32>, vector<16x128xf32>, vector<16x128xf32> -> vector<16x384xf32>
    %c0_18 = arith.constant 0 : index
    %c0_19 = arith.constant 0 : index
    %27 = vector.load %arg8[%c0_18, %c0_19] : memref<1x384xf32, #tpu.memory_space<vmem>>, vector<1x384xf32>
    %28 = vector.broadcast %27 : vector<1x384xf32> to vector<16x384xf32>
    %29 = arith.addf %26, %28 : vector<16x384xf32>
    %c0_20 = arith.constant 0 : index
    %c0_21 = arith.constant 0 : index
    %30 = vector.load %arg9[%c0_20, %c0_21] : memref<16x384xf32, #tpu.memory_space<vmem>>, vector<16x384xf32>
    tpu.vector_store %arg9[%c0_20, %c0_21], %29 {strides = array<i32>} : memref<16x384xf32, #tpu.memory_space<vmem>>, vector<16x384xf32>,
    return
  }
  func.func @transform_0(%arg0: i32) -> (i32, i32) {
    %c0_i32 = arith.constant 0 : i32
    %c0_i32_0 = arith.constant 0 : i32
    return %arg0, %c0_i32 : i32, i32
  }
  func.func @transform_1(%arg0: i32) -> (i32, i32) {
    %c0_i32 = arith.constant 0 : i32
    %c0_i32_0 = arith.constant 0 : i32
    return %arg0, %c0_i32 : i32, i32
  }
  func.func @transform_2(%arg0: i32) -> (i32, i32) {
    %c0_i32 = arith.constant 0 : i32
    %c0_i32_0 = arith.constant 0 : i32
    %c0_i32_1 = arith.constant 0 : i32
    return %c0_i32, %c0_i32_0 : i32, i32
  }
  func.func @transform_3(%arg0: i32) -> (i32, i32) {
    %c0_i32 = arith.constant 0 : i32
    %c0_i32_0 = arith.constant 0 : i32
    %c0_i32_1 = arith.constant 0 : i32
    return %c0_i32, %c0_i32_0 : i32, i32
  }
  func.func @transform_4(%arg0: i32) -> (i32, i32) {
    %c0_i32 = arith.constant 0 : i32
    %c0_i32_0 = arith.constant 0 : i32
    %c0_i32_1 = arith.constant 0 : i32
    return %c0_i32, %c0_i32_0 : i32, i32
  }
  func.func @transform_5(%arg0: i32) -> (i32, i32) {
    %c0_i32 = arith.constant 0 : i32
    %c0_i32_0 = arith.constant 0 : i32
    %c0_i32_1 = arith.constant 0 : i32
    return %c0_i32, %c0_i32_0 : i32, i32
  }
  func.func @transform_6(%arg0: i32) -> (i32, i32) {
    %c0_i32 = arith.constant 0 : i32
    %c0_i32_0 = arith.constant 0 : i32
    %c0_i32_1 = arith.constant 0 : i32
    return %c0_i32, %c0_i32_0 : i32, i32
  }
  func.func @transform_7(%arg0: i32) -> (i32, i32) {
    %c0_i32 = arith.constant 0 : i32
    %c0_i32_0 = arith.constant 0 : i32
    %c0_i32_1 = arith.constant 0 : i32
    return %c0_i32, %c0_i32_0 : i32, i32
  }
  func.func @transform_8(%arg0: i32) -> (i32, i32) {
    %c0_i32 = arith.constant 0 : i32
    %c0_i32_0 = arith.constant 0 : i32
    return %arg0, %c0_i32 : i32, i32
  }
}

</mosaic_0001>

<bundles_post_ra>
// kernel: tpu_custom_call.1
= control target key start
LH: loop header
LB: loop body
LE: loop exit
PB: predicated region body
PF: predicated region fallthrough
CT: control target
= control target key end

     0   :  { %13 = vsyncpa [#allocation3], 0  ;;  %s1489_s0 = inlined_call_operand.hbm [shape: f32[16,10], index: 0, kind: input, shape index: {}]   ;;  %s1490_s1 = inlined_call_operand.hbm [shape: f32[16,128], index: 1, kind: input, shape index: {}]   ;;  %s1491_s2 = inlined_call_operand.hbm [shape: bf16[10,768], index: 2, kind: input, shape index: {}]   ;;  %s1492_s3 = inlined_call_operand.hbm [shape: f32[1,768], index: 3, kind: input, shape index: {}]   ;;  %s1493_s4 = inlined_call_operand.hbm [shape: bf16[256,128], index: 4, kind: input, shape index: {}]   ;;  %s1494_s5 = inlined_call_operand.hbm [shape: bf16[256,128], index: 5, kind: input, shape index: {}]   ;;  %s1495_s6 = inlined_call_operand.hbm [shape: bf16[256,128], index: 6, kind: input, shape index: {}]   ;;  %s1496_s7 = inlined_call_operand.vmem [shape: f32[1,384], index: 7, kind: input, shape index: {}]   ;;  %s1497_s8 = inlined_call_operand.hbm [shape: f32[16,384], index: 8, kind: output, shape index: {}]  }
   0x1   :  { %14 = vsyncpa [#allocation6], 0 }
   0x2   :  { %15 = vsyncpa [#allocation9], 0 }
   0x3   :  { %16 = vsyncpa [#allocation12], 0 }
   0x4   :  { %17 = vsyncpa [#allocation4], 0  ;;  %s35_s29 = sshll.u32 %s1490_s1, 4  ;;  %s1368_s30 = smov [#allocation5]   ;;  %s36_s29 = int_to_ptr.hbm [resolvable:$true] %s35_s29 }
   0x5   :  { %s37_s9 = sshll.u32 %s1368_s30, 4  ;;  %s62_s12 = sshll.u32 %s1492_s3, 4  ;;  %s38_s9 = int_to_ptr.vmem [resolvable:$true] %s37_s9  ;;  %s63_s12 = int_to_ptr.hbm [resolvable:$true] %s62_s12 }
   0x6   :  { %s1369_s13 = smov 128   ;;  %s1370_s14 = smov 8  }
   0x7   :  { %43 = dma.hbm_to_vmem [thread:$0]  %s36_s29, 256, %s38_s9, [#allocation6], %s1369_s13, %s1369_s13, %s1370_s14  }
   0x8   :  { %s1371_s15 = smov [#allocation8]   ;;  %s85_s1 = sshll.u32 %s1494_s5, 4  ;;  %s86_s1 = int_to_ptr.hbm [resolvable:$true] %s85_s1 }
   0x9   :  { %s64_s16 = sshll.u32 %s1371_s15, 4  ;;  %s1372_s19 = smov [#allocation11]   ;;  %s65_s16 = int_to_ptr.vmem [resolvable:$true] %s64_s16 }
   0xa   :  { %67 = dma.hbm_to_vmem [thread:$0]  %s63_s12, 96, %s65_s16, [#allocation9]  }
   0xb   :  { %s87_s20 = sshll.u32 %s1372_s19, 4  ;;  %s22_s3 = sshll.u32 %s1489_s0, 4  ;;  %s88_s20 = int_to_ptr.vmem [resolvable:$true] %s87_s20  ;;  %s23_s3 = int_to_ptr.hbm [resolvable:$true] %s22_s3 }
   0xc   :  { %s1373_s23 = smov 64   ;;  %s1374_s24 = smov 4  }
   0xd   :  { %93 = dma.hbm_to_vmem [thread:$0]  %s86_s1, 2048, %s88_s20, [#allocation12], %s1373_s23, %s1373_s23, %s1374_s24  }
   0xe   :  { %s1375_s25 = smov [#allocation2]   ;;  %s48_s5 = sshll.u32 %s1491_s2, 4  ;;  %s49_s5 = int_to_ptr.hbm [resolvable:$true] %s48_s5 }
   0xf   :  { %s24_s26 = sshll.u32 %s1375_s25, 4  ;;  %s1376_s29 = smov [#allocation7]   ;;  %s25_s26 = int_to_ptr.vmem [resolvable:$true] %s24_s26 }
  0x10   :  { %30 = dma.hbm_to_vmem [thread:$0]  %s23_s3, 256, %s25_s26, [#allocation3], %s1369_s13, %s1369_s13, %s1370_s14  }
  0x11   :  { %s50_s30 = sshll.u32 %s1376_s29, 4  ;;  %s72_s10 = sshll.u32 %s1493_s4, 4  ;;  %s51_s30 = int_to_ptr.vmem [resolvable:$true] %s50_s30  ;;  %s73_s10 = int_to_ptr.hbm [resolvable:$true] %s72_s10 }
  0x12   :  { %s1377_s11 = smov 384   ;;  %s1378_s12 = smov 24  }
  0x13   :  { %56 = dma.hbm_to_vmem [thread:$0]  %s49_s5, 768, %s51_s30, [#allocation6], %s1377_s11, %s1377_s11, %s1378_s12  }
  0x14   :  { %s1379_s15 = smov [#allocation10]   ;;  %s98_s13 = sshll.u32 %s1495_s6, 4  ;;  %s99_s13 = int_to_ptr.hbm [resolvable:$true] %s98_s13 }
  0x15   :  { %s74_s16 = sshll.u32 %s1379_s15, 4  ;;  %s1380_s4 = smov [#allocation13]   ;;  %s75_s16 = int_to_ptr.vmem [resolvable:$true] %s74_s16 }
  0x16   :  { %80 = dma.hbm_to_vmem [thread:$0]  %s73_s10, 2048, %s75_s16, [#allocation9], %s1373_s23, %s1373_s23, %s1374_s24  }
  0x17   :  { %s100_s14 = sshll.u32 %s1380_s4, 4  ;;  %s101_s14 = int_to_ptr.vmem [resolvable:$true] %s100_s14 }
  0x18   :  { %106 = dma.hbm_to_vmem [thread:$0]  %s99_s13, 2048, %s101_s14, [#allocation12], %s1373_s23, %s1373_s23, %s1374_s24  }
  0x19   :  { %1358 = dma.done.wait [#allocation3], 256  }
  0x1a   :  { %1359 = vsyncadd [#allocation3], 4294967040 }
  0x1b   :  { %1360 = dma.done.wait [#allocation6], 1024  }
  0x1c   :  { %1361 = vsyncadd [#allocation6], 4294966272 }
  0x1d   :  { %1362 = dma.done.wait [#allocation9], 2144  }
  0x1e   :  { %1363 = vsyncadd [#allocation9], 4294965152 }
  0x1f   :  { %1364 = dma.done.wait [#allocation12], 4096  }
  0x20   :  { %1365 = vsyncadd [#allocation12], 4294963200  ;;  %vm189_vm0 = vcmask 1044480   ;;  %v878_v0 = vld [vmem:[#allocation7] sm:$0xf]  ;;  %vm185_vm1 = vcmask 80896  }
  0x21   :  { %v1101_v1 = vld [vmem:[#allocation7 + $0x14] sm:$0x10]  ;;  %v1098_v2 = vld [vmem:[#allocation7 + $0x4] sm:$0xf]  ;;  %v880_v4 = vld [vmem:[#allocation7 + $0x18] sm:$0x10] }
  0x22   :  { %v879_v3 = vor.u32 %v1101_v1, %v878_v0  ;;  %v886_v5 = vld [vmem:[#allocation7 + $0x8] sm:$0xf]  ;;  %v1102_v6 = vld [vmem:[#allocation7 + $0x1c] sm:$0x10]  ;;  %v883_v7 = vor.u32 %v1098_v2, %v880_v4  ;;  %v1099_v9 = vld [vmem:[#allocation7 + $0xc] sm:$0xf] }
  0x23   :  { %v887_v8 = vor.u32 %v1102_v6, %v886_v5  ;;  %v888_v10 = vld [vmem:[#allocation7 + $0x20] sm:$0x10]  ;;  %v139_v14 = vld [vmem:[#allocation2 + $0x8] sm:$0xff]  ;;  %v894_v15 = vld [vmem:[#allocation7 + $0x10] sm:$0xf]  ;;  %s860_s21 = sshll.u32 %s1497_s8, 4  ;;  %s861_s21 = int_to_ptr.hbm [resolvable:$true] %s860_s21 }
  0x24   :  { %v138_v11 = vld [vmem:[#allocation2] sm:$0xff]  ;;  %v191_v12 = vsel %vm189_vm0, %v879_v3, 0  ;;  %v891_v13 = vor.u32 %v1099_v9, %v888_v10  ;;  %v1103_v16 = vld [vmem:[#allocation7 + $0x24] sm:$0x10]  ;;  %v194_v17 = vsel %vm189_vm0, %v883_v7, 0  ;;  %v1111_v25 = vld [vmem:[#allocation10 + $0x38] sm:$0xff] }
  0x25   :  { %215 = vmatpush.bf16.msra.mxu0 %v191_v12  ;;  %v197_v18 = vsel %vm189_vm0, %v887_v8, 0  ;;  %v140_v19 = vpack.c.bf16 %v139_v14, %v138_v11  ;;  %v895_v20 = vor.u32 %v1103_v16, %v894_v15  ;;  %v1100_v21 = vld [vmem:[#allocation7 + $0x14] sm:$0xf]  ;;  %v896_v22 = vld [vmem:[#allocation7 + $0x28] sm:$0x10]  ;;  %229 = vmatpush.bf16.msra.mxu1 %v194_v17  ;;  %v1109_v33 = vld [vmem:[#allocation10 + $0x28] sm:$0xff] }
  0x26   :  { %243 = vmatpush.bf16.msra.mxu2 %v197_v18  ;;  %v200_v23 = vsel %vm189_vm0, %v891_v13, 0  ;;  %v899_v24 = vor.u32 %v1100_v21, %v896_v22  ;;  %v1119_v27 = vld [vmem:[#allocation10 + $0x78] sm:$0xff]  ;;  %v1110_v29 = vld [vmem:[#allocation10 + $0x30] sm:$0xff]  ;;  %v1117_v36 = vld [vmem:[#allocation10 + $0x68] sm:$0xff] }
  0x27   :  { %257 = vmatpush.bf16.msra.mxu3 %v200_v23  ;;  %v203_v26 = vsel %vm189_vm0, %v895_v20, 0  ;;  %v1127_v30 = vld [vmem:[#allocation11 + $0x38] sm:$0xff]  ;;  %v1118_v32 = vld [vmem:[#allocation10 + $0x70] sm:$0xff]  ;;  %v1108_v37 = vld [vmem:[#allocation10 + $0x20] sm:$0xff] }
  0x28   :  { %900 = vmatmul.msk.bf16.vlgmr.msra.gmra.mxu0 %vm185_vm1, %v140_v19  ;;  %v206_v28 = vsel %vm189_vm0, %v899_v24, 0  ;;  %901 = vmatmul.msk.bf16.vlgmr.msra.gmra.mxu1 %vm185_vm1, %v140_v19  ;;  %v1135_v31 = vld [vmem:[#allocation11 + $0x78] sm:$0xff]  ;;  %v1126_v34 = vld [vmem:[#allocation11 + $0x30] sm:$0xff]  ;;  %v1116_v38 = vld [vmem:[#allocation10 + $0x60] sm:$0xff] }
  0x29   :  { %902 = vmatmul.msk.bf16.vlgmr.msra.gmra.mxu2 %vm185_vm1, %v140_v19  ;;  %271 = vmatpush.bf16.msrb.mxu0 %v203_v26  ;;  %v1134_v35 = vld [vmem:[#allocation11 + $0x70] sm:$0xff]  ;;  %v1107_v39 = vld [vmem:[#allocation10 + $0x18] sm:$0xff]  ;;  %v1105_v43 = vld [vmem:[#allocation10 + $0x8] sm:$0xff] }
  0x2a   :  { %538 = vmatpush.bf16.msrb.mxu2 %v1111_v25  ;;  %903 = vmatmul.msk.bf16.vlgmr.msra.gmra.mxu3 %vm185_vm1, %v140_v19  ;;  %v1115_v40 = vld [vmem:[#allocation10 + $0x58] sm:$0xff]  ;;  %v1106_v41 = vld [vmem:[#allocation10 + $0x10] sm:$0xff]  ;;  %v1113_v44 = vld [vmem:[#allocation10 + $0x48] sm:$0xff] }
  0x2b   :  { %285 = vmatpush.bf16.msrb.mxu1 %v206_v28  ;;  %552 = vmatpush.bf16.msrb.mxu3 %v1119_v27  ;;  %v1114_v42 = vld [vmem:[#allocation10 + $0x50] sm:$0xff]  ;;  %v1125_v45 = vld [vmem:[#allocation11 + $0x28] sm:$0xff]  ;;  %v1104_v47 = vld [vmem:[#allocation10] sm:$0xff] }
  0x2c   :  { %v1133_v46 = vld [vmem:[#allocation11 + $0x68] sm:$0xff]  ;;  %v1112_v48 = vld [vmem:[#allocation10 + $0x40] sm:$0xff]  ;;  %v1143_v49 = vld [vmem:[#allocation13 + $0x38] sm:$0xff] }
  0x2d   :  { %672 = vmatpush.bf16.msra.mxu0 %v1127_v30  ;;  %v1151_v50 = vld [vmem:[#allocation13 + $0x78] sm:$0xff]  ;;  %v1124_v51 = vld [vmem:[#allocation11 + $0x20] sm:$0xff]  ;;  %v1142_v53 = vld [vmem:[#allocation13 + $0x30] sm:$0xff] }
  0x2e   :  { %539 = vmatpush.bf16.msrb.mxu2 %v1110_v29  ;;  %v1132_v52 = vld [vmem:[#allocation11 + $0x60] sm:$0xff]  ;;  %v1150_v54 = vld [vmem:[#allocation13 + $0x70] sm:$0xff]  ;;  %v1123_v55 = vld [vmem:[#allocation11 + $0x18] sm:$0xff] }
  0x2f   :  { %686 = vmatpush.bf16.msra.mxu1 %v1135_v31  ;;  %553 = vmatpush.bf16.msrb.mxu3 %v1118_v32  ;;  %v1131_v56 = vld [vmem:[#allocation11 + $0x58] sm:$0xff]  ;;  %v1141_v57 = vld [vmem:[#allocation13 + $0x28] sm:$0xff]  ;;  %v1122_v59 = vld [vmem:[#allocation11 + $0x10] sm:$0xff] }
  0x30   :  { %v1149_v58 = vld [vmem:[#allocation13 + $0x68] sm:$0xff]  ;;  %v1130_v60 = vld [vmem:[#allocation11 + $0x50] sm:$0xff]  ;;  %v1140_v61 = vld [vmem:[#allocation13 + $0x20] sm:$0xff] }
  0x31   :  { %673 = vmatpush.bf16.msra.mxu0 %v1126_v34  ;;  %v1148_v62 = vld [vmem:[#allocation13 + $0x60] sm:$0xff]  ;;  %v1121_v63 = vld [vmem:[#allocation11 + $0x8] sm:$0xff]  ;;  %v1139_v1 = vld [vmem:[#allocation13 + $0x18] sm:$0xff] }
  0x32   :  { %540 = vmatpush.bf16.msrb.mxu2 %v1109_v33  ;;  %v1129_v0 = vld [vmem:[#allocation11 + $0x48] sm:$0xff]  ;;  %v1147_v2 = vld [vmem:[#allocation13 + $0x58] sm:$0xff]  ;;  %v1120_v3 = vld [vmem:[#allocation11] sm:$0xff] }
  0x33   :  { %687 = vmatpush.bf16.msra.mxu1 %v1134_v35  ;;  %554 = vmatpush.bf16.msrb.mxu3 %v1117_v36  ;;  %v1128_v4 = vld [vmem:[#allocation11 + $0x40] sm:$0xff]  ;;  %v1472_v5 = vld [vmem:[#allocation8] sm:$0x3f]  ;;  %v1138_v6 = vld [vmem:[#allocation13 + $0x10] sm:$0xff] }
  0x34   :  { %v1146_v7 = vld [vmem:[#allocation13 + $0x50] sm:$0xff]  ;;  %v149_v8 = vperm.slane %v1472_v5, 0  ;;  %v150_v9 = vperm.slane %v1472_v5, 1  ;;  %v1137_v10 = vld [vmem:[#allocation13 + $0x8] sm:$0xff]  ;;  %v1136_v15 = vld [vmem:[#allocation13] sm:$0xff]  ;;  %v151_v18 = vperm.slane %v1472_v5, 2 }
  0x35   :  { %674 = vmatpush.bf16.msra.mxu0 %v1125_v45  ;;  %v1145_v11 = vld [vmem:[#allocation13 + $0x48] sm:$0xff]  ;;  %v1144_v16 = vld [vmem:[#allocation13 + $0x40] sm:$0xff]  ;;  %v152_v20 = vperm.slane %v1472_v5, 3 }
  0x36   :  { %541 = vmatpush.bf16.msrb.mxu2 %v1108_v37 }
  0x37   :  { %555 = vmatpush.bf16.msrb.mxu3 %v1116_v38  ;;  %688 = vmatpush.bf16.msra.mxu1 %v1133_v46 }
  0x38   :  { %904 = vmatmul.msk.bf16.vlgmr.msrb.gmra.mxu0 %vm185_vm1, %v140_v19  ;;  %905 = vmatmul.msk.bf16.vlgmr.msrb.gmra.mxu1 %vm185_vm1, %v140_v19 }
  0x39   :  { %675 = vmatpush.bf16.msra.mxu0 %v1124_v51 }
  0x3a   :  { %542 = vmatpush.bf16.msrb.mxu2 %v1107_v39  ;;  %v153_v39 = vperm.slane %v1472_v5, 4 }
  0x3b   :  { %556 = vmatpush.bf16.msrb.mxu3 %v1115_v40  ;;  %689 = vmatpush.bf16.msra.mxu1 %v1132_v52 }
  0x3d   :  { %676 = vmatpush.bf16.msra.mxu0 %v1123_v55 }
  0x3e   :  { %543 = vmatpush.bf16.msrb.mxu2 %v1106_v41 }
  0x3f   :  { %557 = vmatpush.bf16.msrb.mxu3 %v1114_v42  ;;  %690 = vmatpush.bf16.msra.mxu1 %v1131_v56  ;;  %v154_v42 = vperm.slane %v1472_v5, 5 }
  0x41   :  { %677 = vmatpush.bf16.msra.mxu0 %v1122_v59 }
  0x42   :  { %544 = vmatpush.bf16.msrb.mxu2 %v1105_v43 }
  0x43   :  { %558 = vmatpush.bf16.msrb.mxu3 %v1113_v44  ;;  %691 = vmatpush.bf16.msra.mxu1 %v1130_v60 }
  0x45   :  { %678 = vmatpush.bf16.msra.mxu0 %v1121_v63 }
  0x46   :  { %545 = vmatpush.bf16.msrb.mxu2 %v1104_v47 }
  0x47   :  { %559 = vmatpush.bf16.msrb.mxu3 %v1112_v48  ;;  %692 = vmatpush.bf16.msra.mxu1 %v1129_v0 }
  0x49   :  { %679 = vmatpush.bf16.msra.mxu0 %v1120_v3 }
  0x4a   :  { %806 = vmatpush.bf16.msra.mxu2 %v1143_v49 }
  0x4b   :  { %820 = vmatpush.bf16.msra.mxu3 %v1151_v50  ;;  %693 = vmatpush.bf16.msra.mxu1 %v1128_v4 }
  0x4e   :  { %807 = vmatpush.bf16.msra.mxu2 %v1142_v53 }
  0x4f   :  { %821 = vmatpush.bf16.msra.mxu3 %v1150_v54 }
  0x52   :  { %808 = vmatpush.bf16.msra.mxu2 %v1141_v57 }
  0x53   :  { %822 = vmatpush.bf16.msra.mxu3 %v1149_v58 }
  0x56   :  { %809 = vmatpush.bf16.msra.mxu2 %v1140_v61 }
  0x57   :  { %823 = vmatpush.bf16.msra.mxu3 %v1148_v62 }
  0x5a   :  { %810 = vmatpush.bf16.msra.mxu2 %v1139_v1 }
  0x5b   :  { %824 = vmatpush.bf16.msra.mxu3 %v1147_v2 }
  0x5e   :  { %811 = vmatpush.bf16.msra.mxu2 %v1138_v6 }
  0x5f   :  { %825 = vmatpush.bf16.msra.mxu3 %v1146_v7 }
  0x62   :  { %812 = vmatpush.bf16.msra.mxu2 %v1137_v10 }
  0x63   :  { %826 = vmatpush.bf16.msra.mxu3 %v1145_v11 }
  0x66   :  { %813 = vmatpush.bf16.msra.mxu2 %v1136_v15 }
  0x67   :  { %827 = vmatpush.bf16.msra.mxu3 %v1144_v16 }
  0xa5   :  { %v217_v12 = vpop.f32.mrf.mxu0  ;;  %v231_v14 = vpop.f32.mrf.mxu1 }
  0xa6   :  { %v218_v13 = vadd.f32 %v217_v12, %v149_v8  ;;  %v232_v17 = vadd.f32 %v231_v14, %v150_v9 }
  0xa8   :  { %v304_v19 = vmul.f32 0.01, %v218_v13  ;;  %vm292_vm2 = vcmp.gt.f32.partialorder %v218_v13, 0.0  ;;  %v305_v21 = vmul.f32 0.01, %v232_v17  ;;  %vm293_vm3 = vcmp.gt.f32.partialorder %v232_v17, 0.0 }
  0xaa   :  { %v316_v26 = vsel %vm292_vm2, %v218_v13, %v304_v19  ;;  %v317_v30 = vsel %vm293_vm3, %v232_v17, %v305_v21 }
  0xab   :  { %v328_v40 = vpack.c.bf16 %v317_v30, %v316_v26  ;;  %v334_v26 = vld [vmem:[#allocation5] sm:$0xff] }
  0xac   :  { %v245_v22 = vpop.f32.mrf.mxu2 }
  0xad   :  { %v246_v23 = vadd.f32 %v245_v22, %v151_v18  ;;  %v259_v24 = vpop.f32.mrf.mxu3  ;;  %v219_v25 = vpop.f32.mrf.mxu0  ;;  %v434_v56 = vunpack.c.l.b16 %v328_v40  ;;  %v435_v58 = vunpack.c.h.b16 %v328_v40  ;;  %v335_v40 = vld [vmem:[#allocation5 + $0x8] sm:$0xff] }
  0xae   :  { %v260_v27 = vadd.f32 %v259_v24, %v152_v20  ;;  %v220_v28 = vadd.f32 %v219_v25, %v149_v8  ;;  %v233_v29 = vpop.f32.mrf.mxu1 }
  0xaf   :  { %vm294_vm4 = vcmp.gt.f32.partialorder %v246_v23, 0.0  ;;  %v306_v31 = vmul.f32 0.01, %v246_v23  ;;  %v234_v32 = vadd.f32 %v233_v29, %v150_v9 }
  0xb0   :  { %vm295_vm5 = vcmp.gt.f32.partialorder %v260_v27, 0.0  ;;  %v307_v33 = vmul.f32 0.01, %v260_v27  ;;  %vm298_vm6 = vcmp.gt.f32.partialorder %v220_v28, 0.0  ;;  %v310_v34 = vmul.f32 0.01, %v220_v28 }
  0xb1   :  { %vm299_vm7 = vcmp.gt.f32.partialorder %v234_v32, 0.0  ;;  %v311_v35 = vmul.f32 0.01, %v234_v32  ;;  %v318_v36 = vsel %vm294_vm4, %v246_v23, %v306_v31 }
  0xb2   :  { %v319_v37 = vsel %vm295_vm5, %v260_v27, %v307_v33  ;;  %v322_v38 = vsel %vm298_vm6, %v220_v28, %v310_v34  ;;  %v834_v27 = vld [vmem:[%s1496_s7] sm:$0x7]  ;;  %s1381_s7 = smov [#allocation14]  }
  0xb3   :  { %v323_v41 = vsel %vm299_vm7, %v234_v32, %v311_v35  ;;  %v329_v45 = vpack.c.bf16 %v319_v37, %v318_v36  ;;  %v836_v32 = vperm.slane %v834_v27, 0  ;;  %v837_v35 = vperm.slane %v834_v27, 1  ;;  %s858_s1 = sshll.u32 %s1381_s7, 4  ;;  %s859_s1 = int_to_ptr.vmem [resolvable:$true] %s858_s1 }
  0xb4   :  { %v331_v43 = vpack.c.bf16 %v323_v41, %v322_v38  ;;  %v247_v44 = vpop.f32.mrf.mxu2 }
  0xb5   :  { %v248_v46 = vadd.f32 %v247_v44, %v151_v18  ;;  %v261_v47 = vpop.f32.mrf.mxu3  ;;  %v273_v48 = vpop.f32.mrf.mxu0  ;;  %v568_v61 = vunpack.c.l.b16 %v329_v45  ;;  %v569_v1 = vunpack.c.h.b16 %v329_v45 }
  0xb6   :  { %v262_v49 = vadd.f32 %v261_v47, %v152_v20  ;;  %v274_v50 = vadd.f32 %v273_v48, %v153_v39  ;;  %v287_v51 = vpop.f32.mrf.mxu1  ;;  %v436_v52 = vunpack.c.l.b16 %v331_v43  ;;  %v437_v53 = vunpack.c.h.b16 %v331_v43 }
  0xb7   :  { %vm300_vm8 = vcmp.gt.f32.partialorder %v248_v46, 0.0  ;;  %v312_v54 = vmul.f32 0.01, %v248_v46  ;;  %v288_v55 = vadd.f32 %v287_v51, %v154_v42 }
  0xb8   :  { %vm301_vm9 = vcmp.gt.f32.partialorder %v262_v49, 0.0  ;;  %v313_v57 = vmul.f32 0.01, %v262_v49  ;;  %v438_v60 = vpack.c.b16 %v436_v52, %v434_v56  ;;  %v308_v63 = vmul.f32 0.01, %v274_v50 }
  0xb9   :  { %v324_v59 = vsel %vm300_vm8, %v248_v46, %v312_v54  ;;  %v439_v0 = vpack.c.b16 %v437_v53, %v435_v58  ;;  %vm296_vm10 = vcmp.gt.f32.partialorder %v274_v50, 0.0  ;;  %v309_v3 = vmul.f32 0.01, %v288_v55 }
  0xba   :  { %v325_v62 = vsel %vm301_vm9, %v262_v49, %v313_v57  ;;  %546 = vmatmul.bf16.vlgmr.msrb.gmra.mxu2 %v438_v60  ;;  %vm297_vm11 = vcmp.gt.f32.partialorder %v288_v55, 0.0  ;;  %v320_v7 = vsel %vm296_vm10, %v274_v50, %v308_v63  ;;  %v838_v54 = vperm.slane %v834_v27, 2 }
  0xbb   :  { %v332_v2 = vpack.c.bf16 %v325_v62, %v324_v59  ;;  %560 = vmatmul.bf16.vlgmr.msrb.gmra.mxu3 %v439_v0  ;;  %v321_v10 = vsel %vm297_vm11, %v288_v55, %v309_v3 }
  0xbc   :  { %v330_v16 = vpack.c.bf16 %v321_v10, %v320_v7 }
  0xbd   :  { %v570_v4 = vunpack.c.l.b16 %v332_v2  ;;  %v571_v5 = vunpack.c.h.b16 %v332_v2  ;;  %v275_v6 = vpop.f32.mrf.mxu0 }
  0xbe   :  { %v276_v8 = vadd.f32 %v275_v6, %v153_v39  ;;  %v289_v9 = vpop.f32.mrf.mxu1  ;;  %v702_v20 = vunpack.c.l.b16 %v330_v16  ;;  %v703_v21 = vunpack.c.h.b16 %v330_v16 }
  0xbf   :  { %v290_v11 = vadd.f32 %v289_v9, %v154_v42  ;;  %v572_v12 = vpack.c.b16 %v570_v4, %v568_v61  ;;  %v573_v13 = vpack.c.b16 %v571_v5, %v569_v1 }
  0xc0   :  { %vm302_vm12 = vcmp.gt.f32.partialorder %v276_v8, 0.0  ;;  %v314_v14 = vmul.f32 0.01, %v276_v8 }
  0xc1   :  { %vm303_vm13 = vcmp.gt.f32.partialorder %v290_v11, 0.0  ;;  %v315_v15 = vmul.f32 0.01, %v290_v11  ;;  %680 = vmatmul.bf16.vlgmr.msra.gmra.mxu0 %v572_v12  ;;  %694 = vmatmul.bf16.vlgmr.msra.gmra.mxu1 %v573_v13 }
  0xc2   :  { %v326_v17 = vsel %vm302_vm12, %v276_v8, %v314_v14 }
  0xc3   :  { %v327_v18 = vsel %vm303_vm13, %v290_v11, %v315_v15 }
  0xc4   :  { %v333_v19 = vpack.c.bf16 %v327_v18, %v326_v17 }
  0xc6   :  { %v704_v22 = vunpack.c.l.b16 %v333_v19  ;;  %v705_v23 = vunpack.c.h.b16 %v333_v19 }
  0xc8   :  { %v706_v24 = vpack.c.b16 %v704_v22, %v702_v20  ;;  %v707_v25 = vpack.c.b16 %v705_v23, %v703_v21 }
  0xca   :  { %814 = vmatmul.bf16.vlgmr.msra.gmra.mxu2 %v706_v24 }
  0xcb   :  { %828 = vmatmul.bf16.vlgmr.msra.gmra.mxu3 %v707_v25 }
 0x13d   :  { %v547_v28 = vpop.f32.mrf.mxu2 }
 0x13e   :  { %v681_v29 = vpop.f32.mrf.mxu0  ;;  %v548_v30 = vadd.f32 %v547_v28, %v334_v26  ;;  %v561_v31 = vpop.f32.mrf.mxu3 }
 0x13f   :  { %v682_v33 = vadd.f32 %v681_v29, %v334_v26  ;;  %v695_v34 = vpop.f32.mrf.mxu1 }
 0x140   :  { %v562_v36 = vadd.f32 %v561_v31, %v548_v30 }
 0x141   :  { %v696_v37 = vadd.f32 %v695_v34, %v682_v33 }
 0x142   :  { %v842_v38 = vadd.f32 %v836_v32, %v562_v36 }
 0x143   :  { %v843_v39 = vadd.f32 %v837_v35, %v696_v37 }
 0x144   :  { %848 = vst [vmem:[#allocation14] sm:$0xff] %v842_v38 }
 0x145   :  { %849 = vst [vmem:[#allocation14 + $0x8] sm:$0xff] %v843_v39  ;;  %v549_v41 = vpop.f32.mrf.mxu2 }
 0x146   :  { %v683_v42 = vpop.f32.mrf.mxu0  ;;  %v550_v43 = vadd.f32 %v549_v41, %v335_v40  ;;  %v563_v44 = vpop.f32.mrf.mxu3 }
 0x147   :  { %v684_v45 = vadd.f32 %v683_v42, %v335_v40  ;;  %v697_v46 = vpop.f32.mrf.mxu1 }
 0x148   :  { %v564_v47 = vadd.f32 %v563_v44, %v550_v43 }
 0x149   :  { %v698_v48 = vadd.f32 %v697_v46, %v684_v45 }
 0x14a   :  { %v845_v49 = vadd.f32 %v836_v32, %v564_v47 }
 0x14b   :  { %v846_v50 = vadd.f32 %v837_v35, %v698_v48 }
 0x14c   :  { %851 = vst [vmem:[#allocation14 + $0x18] sm:$0xff] %v845_v49 }
 0x14d   :  { %852 = vst [vmem:[#allocation14 + $0x20] sm:$0xff] %v846_v50  ;;  %v815_v51 = vpop.f32.mrf.mxu2 }
 0x14e   :  { %v816_v52 = vadd.f32 %v815_v51, %v334_v26  ;;  %v829_v53 = vpop.f32.mrf.mxu3 }
 0x150   :  { %v830_v55 = vadd.f32 %v829_v53, %v816_v52 }
 0x152   :  { %v844_v56 = vadd.f32 %v838_v54, %v830_v55 }
 0x154   :  { %850 = vst [vmem:[#allocation14 + $0x10] sm:$0xff] %v844_v56 }
 0x155   :  { %v817_v57 = vpop.f32.mrf.mxu2 }
 0x156   :  { %v818_v58 = vadd.f32 %v817_v57, %v335_v40  ;;  %v831_v59 = vpop.f32.mrf.mxu3 }
 0x158   :  { %v832_v60 = vadd.f32 %v831_v59, %v818_v58 }
 0x15a   :  { %v847_v61 = vadd.f32 %v838_v54, %v832_v60 }
 0x15c   :  { %853 = vst [vmem:[#allocation14 + $0x28] sm:$0xff] %v847_v61 }
 0x15d   :  { %866 = dma.vmem_to_hbm [thread:$0]  %s859_s1, 768, %s861_s21, [#allocation4], %s1377_s11, %s1377_s11, %s1378_s12  }
 0x15e   :  { %1366 = dma.done.wait [#allocation4], 768  }
 0x15f   :  { %1367 = vsyncadd [#allocation4], 4294966528 }
 0x160   :  { %871 = vsyncpa [#allocation3], 1 }
 0x161   :  { %872 = vsyncpa [#allocation6], 1 }
 0x162   :  { %873 = vsyncpa [#allocation9], 1 }
 0x163   :  { %874 = vsyncpa [#allocation12], 1 }
 0x164   :  { %875 = vsyncpa [#allocation4], 1 }

</bundles_post_ra>
